<compile_context>
chip_gen: v5e
topology: v5e:2x2
jax: 0.10.0
libtpu: 0.0.40
codegen_flags: <defaults>
</compile_context>

<pallas_src>
import functools

import numpy as np
import jax
import jax.numpy as jnp
from jax.experimental import pallas as pl
from jax.experimental.pallas import tpu as pltpu

SPANS_PER_BLOCK = 8


def _make_span_block_kernel(seq_len: int, spans_per_block: int):
    """Returns a kernel computing `spans_per_block` masked span-sums via one MXU matmul."""

    def kernel(blk_sample_ref, left_ref, right_ref, pooled_ref, out_ref):
        # blk_sample_ref: SMEM i32 (n_blocks,)   sample id of each block (used by index_map)
        # left_ref/right_ref: SMEM i32 (n_rows,) span bounds, grouped by sample
        # pooled_ref: VMEM (S, E2)  pooled embeddings of this block's sample
        # out_ref   : VMEM (spans_per_block, E2) span sums for this block
        del blk_sample_ref  # only consumed by the input index_map
        i = pl.program_id(0)
        base = i * spans_per_block

        pos = jax.lax.broadcasted_iota(jnp.int32, (spans_per_block, seq_len), 1)
        row = jax.lax.broadcasted_iota(jnp.int32, (spans_per_block, seq_len), 0)

        # Broadcast the per-row span bounds (SMEM scalars) into (spans_per_block, S)
        # matrices via a short static select chain (spans_per_block is small & static).
        lefts = jnp.zeros((spans_per_block, seq_len), jnp.int32)
        rights = jnp.zeros((spans_per_block, seq_len), jnp.int32)
        for r in range(spans_per_block):
            lefts = jnp.where(row == r, left_ref[base + r], lefts)
            rights = jnp.where(row == r, right_ref[base + r], rights)

        mask = ((pos >= lefts) & (pos < rights)).astype(pooled_ref.dtype)

        # Segment-sum-as-matmul on the MXU: (spb, S) @ (S, E2) -> (spb, E2), f32 accumulate.
        out_ref[...] = jnp.dot(
            mask, pooled_ref[...], preferred_element_type=jnp.float32
        ).astype(out_ref.dtype)

    return kernel


def span_pool_sums(pooled, blk_sample, lefts, rights, *,
                   spans_per_block=SPANS_PER_BLOCK, compute_dtype=jnp.float32):
    """pooled: (B, S, E2); blk_sample: (n_blocks,) i32; lefts/rights: (n_rows,) i32.

    Returns (n_rows, E2) f32 span sums. Rows with left == right produce zeros.
    """
    B, S, E2 = pooled.shape
    n_blocks = blk_sample.shape[0]
    n_rows = n_blocks * spans_per_block
    assert lefts.shape == (n_rows,) and rights.shape == (n_rows,)

    kernel = _make_span_block_kernel(S, spans_per_block)

    grid_spec = pltpu.PrefetchScalarGridSpec(
        num_scalar_prefetch=3,
        grid=(n_blocks,),
        in_specs=[
            # One (S, E2) pooled slab per sample; consecutive blocks of the same sample
            # reuse the buffer (no re-DMA).
            pl.BlockSpec((None, S, E2), lambda i, bs, lf, rt: (bs[i], 0, 0)),
        ],
        out_specs=pl.BlockSpec((spans_per_block, E2), lambda i, bs, lf, rt: (i, 0)),
    )

    return pl.pallas_call(
        kernel,
        out_shape=jax.ShapeDtypeStruct((n_rows, E2), jnp.float32),
        grid_spec=grid_spec,
        compiler_params=pltpu.CompilerParams(
            dimension_semantics=("parallel",)),  # v7x: split span blocks across both TCs
    )(blk_sample, lefts, rights, pooled.astype(compute_dtype))


@functools.partial(jax.jit, static_argnames=("spans_per_block", "compute_dtype"))
def _device_forward(emb, blk_sample, lefts, rights, ana_idx, pot_idx, *,
                    spans_per_block, compute_dtype):
    """One fused device program: pool once, span sums (Pallas), gather + concat pairs."""
    B, S, E = emb.shape
    E2 = E // 2
    # MaxPool1d(kernel_size=2) over the hidden dim, computed ONCE (hoisted out of the kernel).
    pooled = jnp.max(emb.reshape(B, S, E2, 2), axis=-1)            # (B, S, E2)
    sums = span_pool_sums(pooled, blk_sample, lefts, rights,
                          spans_per_block=spans_per_block,
                          compute_dtype=compute_dtype)             # (n_rows, E2)
    # Vectorized pair construction: single gather + single concat -> (total_pairs, E).
    return jnp.concatenate(
        [jnp.take(sums, ana_idx, axis=0), jnp.take(sums, pot_idx, axis=0)], axis=-1)


def model_forward(emb, anaphor_slices, potential_slices, *,
                  spans_per_block=SPANS_PER_BLOCK, compute_dtype=jnp.float32):
    """Mirrors Model.forward with all feature flags off.

    emb: (B, S, E) f32 — stands in for elmo_representations[0].
    anaphor_slices: list[[l, r]] per sample.
    potential_slices: list[list[[l, r]]] per sample.
    Returns (batch_concat_pairs, potential_slices) — list[list[(E,) array]].
    """
    B, S, E = emb.shape
    assert E % 2 == 0

    # Build per-sample-grouped span rows (anaphor first, then potentials), padded to a
    # multiple of spans_per_block with empty (0, 0) spans so no block mixes samples.
    lefts_l, rights_l, blk_sample_l = [], [], []
    ana_row, pot_rows = [], []
    for b in range(B):
        rows = [(int(anaphor_slices[b][0]), int(anaphor_slices[b][1]))]
        rows += [(int(l), int(r)) for (l, r) in potential_slices[b]]
        n_pad = (-len(rows)) % spans_per_block
        rows += [(0, 0)] * n_pad

        base = len(lefts_l)
        ana_row.append(base)
        pot_rows.append([base + 1 + k for k in range(len(potential_slices[b]))])
        for (l, r) in rows:
            lefts_l.append(l)
            rights_l.append(r)
        blk_sample_l += [b] * (len(rows) // spans_per_block)

    # 1-D int32 prefetch arrays (minimal SMEM padding; rows are grouped by sample).
    lefts = jnp.asarray(np.asarray(lefts_l, dtype=np.int32))
    rights = jnp.asarray(np.asarray(rights_l, dtype=np.int32))
    blk_sample = jnp.asarray(np.asarray(blk_sample_l, dtype=np.int32))

    ana_idx_l, pot_idx_l = [], []
    for b in range(B):
        for ri in pot_rows[b]:
            ana_idx_l.append(ana_row[b])
            pot_idx_l.append(ri)
    ana_idx = jnp.asarray(np.asarray(ana_idx_l, dtype=np.int32))
    pot_idx = jnp.asarray(np.asarray(pot_idx_l, dtype=np.int32))

    pairs_flat = _device_forward(emb, blk_sample, lefts, rights, ana_idx, pot_idx,
                                 spans_per_block=spans_per_block,
                                 compute_dtype=compute_dtype)      # (total_pairs, E)

    # Rebuild the nested list structure of Model.forward's return value (views into the
    # already-computed lane-dense slab; no further device compute).
    batch_concat_pairs = []
    p = 0
    for b in range(B):
        n_p = len(potential_slices[b])
        batch_concat_pairs.append([pairs_flat[p + k] for k in range(n_p)])
        p += n_p
    return batch_concat_pairs, potential_slices


def _reference_forward(emb, anaphor_slices, potential_slices):
    """Pure-numpy reference matching the PyTorch semantics."""
    emb = np.asarray(emb)

    def span_repr(b, l, r):
        span = emb[b, l:r, :]                              # (L, E)
        pooled = np.maximum(span[:, 0::2], span[:, 1::2])  # MaxPool1d(kernel=2)
        return pooled.sum(axis=0)                          # (E/2,)

    out = []
    for b in range(emb.shape[0]):
        ana = span_repr(b, *anaphor_slices[b])
        out.append([np.concatenate([ana, span_repr(b, l, r)])
                    for (l, r) in potential_slices[b]])
    return out


if __name__ == "__main__":
    B, S, E = 2, 16, 256      # small stand-in for (batch, seq_len, elmo_size=1024)

    key = jax.random.PRNGKey(0)
    emb = jax.random.normal(key, (B, S, E), dtype=jnp.float32)

    anaphor_slices = [[3, 5], [7, 10]]
    potential_slices = [
        [[0, 2], [6, 9], [10, 16]],
        [[1, 3], [4, 7], [12, 15]],
    ]

    pairs, pot_slices = model_forward(emb, anaphor_slices, potential_slices)
    jax.block_until_ready(pairs)

    ref = _reference_forward(emb, anaphor_slices, potential_slices)
    for b in range(B):
        for p in range(len(potential_slices[b])):
            np.testing.assert_allclose(np.asarray(pairs[b][p]), ref[b][p],
                                       rtol=1e-5, atol=1e-5)
            assert pairs[b][p].shape == (E,)

    print("KERNEL_OK")
</pallas_src>

<mosaic_0001>
module attributes {stable_mosaic.version = 11 : i64} {
  func.func @kernel(%arg0: i32, %arg1: memref<2xi32, #tpu.memory_space<smem>>, %arg2: memref<16xi32, #tpu.memory_space<smem>>, %arg3: memref<16xi32, #tpu.memory_space<smem>>, %arg4: memref<1x16x128xf32, #tpu.memory_space<vmem>>, %arg5: memref<8x128xf32, #tpu.memory_space<vmem>>) attributes {dimension_semantics = [#tpu.dimension_semantics<parallel>], iteration_bounds = array<i64: 2>, scalar_prefetch = 3 : i64, scratch_operands = 0 : i64, tpu.core_type = #tpu.core_type<tc>, window_params = [{transform_indices = @transform_0, window_bounds = array<i64: 1, 16, 128>}, {transform_indices = @transform_1, window_bounds = array<i64: 8, 128>}]} {
    %c8_i32 = arith.constant 8 : i32
    %0 = arith.muli %arg0, %c8_i32 : i32
    %1 = tpu.iota {dimensions = array<i32: 1>} : vector<8x16xi32>
    %2 = tpu.iota {dimensions = array<i32: 0>} : vector<8x16xi32>
    %c0_i32 = arith.constant 0 : i32
    %3 = vector.broadcast %c0_i32 : i32 to vector<8x16xi32>
    %c0_i32_0 = arith.constant 0 : i32
    %4 = vector.broadcast %c0_i32_0 : i32 to vector<8x16xi32>
    %c0_i32_1 = arith.constant 0 : i32
    %5 = vector.broadcast %c0_i32_1 : i32 to vector<8x16xi32>
    %6 = arith.cmpi eq, %2, %5 : vector<8x16xi32>
    %c0_i32_2 = arith.constant 0 : i32
    %7 = arith.addi %0, %c0_i32_2 : i32
    %8 = arith.index_cast %7 : i32 to index
    %9 = memref.load %arg2[%8] : memref<16xi32, #tpu.memory_space<smem>>
    %10 = vector.broadcast %9 : i32 to vector<8x16xi32>
    %11 = arith.select %6, %10, %3 : vector<8x16xi1>, vector<8x16xi32>
    %c0_i32_3 = arith.constant 0 : i32
    %12 = vector.broadcast %c0_i32_3 : i32 to vector<8x16xi32>
    %13 = arith.cmpi eq, %2, %12 : vector<8x16xi32>
    %c0_i32_4 = arith.constant 0 : i32
    %14 = arith.addi %0, %c0_i32_4 : i32
    %15 = arith.index_cast %14 : i32 to index
    %16 = memref.load %arg3[%15] : memref<16xi32, #tpu.memory_space<smem>>
    %17 = vector.broadcast %16 : i32 to vector<8x16xi32>
    %18 = arith.select %13, %17, %4 : vector<8x16xi1>, vector<8x16xi32>
    %c1_i32 = arith.constant 1 : i32
    %19 = vector.broadcast %c1_i32 : i32 to vector<8x16xi32>
    %20 = arith.cmpi eq, %2, %19 : vector<8x16xi32>
    %c1_i32_5 = arith.constant 1 : i32
    %21 = arith.addi %0, %c1_i32_5 : i32
    %22 = arith.index_cast %21 : i32 to index
    %23 = memref.load %arg2[%22] : memref<16xi32, #tpu.memory_space<smem>>
    %24 = vector.broadcast %23 : i32 to vector<8x16xi32>
    %25 = arith.select %20, %24, %11 : vector<8x16xi1>, vector<8x16xi32>
    %c1_i32_6 = arith.constant 1 : i32
    %26 = vector.broadcast %c1_i32_6 : i32 to vector<8x16xi32>
    %27 = arith.cmpi eq, %2, %26 : vector<8x16xi32>
    %c1_i32_7 = arith.constant 1 : i32
    %28 = arith.addi %0, %c1_i32_7 : i32
    %29 = arith.index_cast %28 : i32 to index
    %30 = memref.load %arg3[%29] : memref<16xi32, #tpu.memory_space<smem>>
    %31 = vector.broadcast %30 : i32 to vector<8x16xi32>
    %32 = arith.select %27, %31, %18 : vector<8x16xi1>, vector<8x16xi32>
    %c2_i32 = arith.constant 2 : i32
    %33 = vector.broadcast %c2_i32 : i32 to vector<8x16xi32>
    %34 = arith.cmpi eq, %2, %33 : vector<8x16xi32>
    %c2_i32_8 = arith.constant 2 : i32
    %35 = arith.addi %0, %c2_i32_8 : i32
    %36 = arith.index_cast %35 : i32 to index
    %37 = memref.load %arg2[%36] : memref<16xi32, #tpu.memory_space<smem>>
    %38 = vector.broadcast %37 : i32 to vector<8x16xi32>
    %39 = arith.select %34, %38, %25 : vector<8x16xi1>, vector<8x16xi32>
    %c2_i32_9 = arith.constant 2 : i32
    %40 = vector.broadcast %c2_i32_9 : i32 to vector<8x16xi32>
    %41 = arith.cmpi eq, %2, %40 : vector<8x16xi32>
    %c2_i32_10 = arith.constant 2 : i32
    %42 = arith.addi %0, %c2_i32_10 : i32
    %43 = arith.index_cast %42 : i32 to index
    %44 = memref.load %arg3[%43] : memref<16xi32, #tpu.memory_space<smem>>
    %45 = vector.broadcast %44 : i32 to vector<8x16xi32>
    %46 = arith.select %41, %45, %32 : vector<8x16xi1>, vector<8x16xi32>
    %c3_i32 = arith.constant 3 : i32
    %47 = vector.broadcast %c3_i32 : i32 to vector<8x16xi32>
    %48 = arith.cmpi eq, %2, %47 : vector<8x16xi32>
    %c3_i32_11 = arith.constant 3 : i32
    %49 = arith.addi %0, %c3_i32_11 : i32
    %50 = arith.index_cast %49 : i32 to index
    %51 = memref.load %arg2[%50] : memref<16xi32, #tpu.memory_space<smem>>
    %52 = vector.broadcast %51 : i32 to vector<8x16xi32>
    %53 = arith.select %48, %52, %39 : vector<8x16xi1>, vector<8x16xi32>
    %c3_i32_12 = arith.constant 3 : i32
    %54 = vector.broadcast %c3_i32_12 : i32 to vector<8x16xi32>
    %55 = arith.cmpi eq, %2, %54 : vector<8x16xi32>
    %c3_i32_13 = arith.constant 3 : i32
    %56 = arith.addi %0, %c3_i32_13 : i32
    %57 = arith.index_cast %56 : i32 to index
    %58 = memref.load %arg3[%57] : memref<16xi32, #tpu.memory_space<smem>>
    %59 = vector.broadcast %58 : i32 to vector<8x16xi32>
    %60 = arith.select %55, %59, %46 : vector<8x16xi1>, vector<8x16xi32>
    %c4_i32 = arith.constant 4 : i32
    %61 = vector.broadcast %c4_i32 : i32 to vector<8x16xi32>
    %62 = arith.cmpi eq, %2, %61 : vector<8x16xi32>
    %c4_i32_14 = arith.constant 4 : i32
    %63 = arith.addi %0, %c4_i32_14 : i32
    %64 = arith.index_cast %63 : i32 to index
    %65 = memref.load %arg2[%64] : memref<16xi32, #tpu.memory_space<smem>>
    %66 = vector.broadcast %65 : i32 to vector<8x16xi32>
    %67 = arith.select %62, %66, %53 : vector<8x16xi1>, vector<8x16xi32>
    %c4_i32_15 = arith.constant 4 : i32
    %68 = vector.broadcast %c4_i32_15 : i32 to vector<8x16xi32>
    %69 = arith.cmpi eq, %2, %68 : vector<8x16xi32>
    %c4_i32_16 = arith.constant 4 : i32
    %70 = arith.addi %0, %c4_i32_16 : i32
    %71 = arith.index_cast %70 : i32 to index
    %72 = memref.load %arg3[%71] : memref<16xi32, #tpu.memory_space<smem>>
    %73 = vector.broadcast %72 : i32 to vector<8x16xi32>
    %74 = arith.select %69, %73, %60 : vector<8x16xi1>, vector<8x16xi32>
    %c5_i32 = arith.constant 5 : i32
    %75 = vector.broadcast %c5_i32 : i32 to vector<8x16xi32>
    %76 = arith.cmpi eq, %2, %75 : vector<8x16xi32>
    %c5_i32_17 = arith.constant 5 : i32
    %77 = arith.addi %0, %c5_i32_17 : i32
    %78 = arith.index_cast %77 : i32 to index
    %79 = memref.load %arg2[%78] : memref<16xi32, #tpu.memory_space<smem>>
    %80 = vector.broadcast %79 : i32 to vector<8x16xi32>
    %81 = arith.select %76, %80, %67 : vector<8x16xi1>, vector<8x16xi32>
    %c5_i32_18 = arith.constant 5 : i32
    %82 = vector.broadcast %c5_i32_18 : i32 to vector<8x16xi32>
    %83 = arith.cmpi eq, %2, %82 : vector<8x16xi32>
    %c5_i32_19 = arith.constant 5 : i32
    %84 = arith.addi %0, %c5_i32_19 : i32
    %85 = arith.index_cast %84 : i32 to index
    %86 = memref.load %arg3[%85] : memref<16xi32, #tpu.memory_space<smem>>
    %87 = vector.broadcast %86 : i32 to vector<8x16xi32>
    %88 = arith.select %83, %87, %74 : vector<8x16xi1>, vector<8x16xi32>
    %c6_i32 = arith.constant 6 : i32
    %89 = vector.broadcast %c6_i32 : i32 to vector<8x16xi32>
    %90 = arith.cmpi eq, %2, %89 : vector<8x16xi32>
    %c6_i32_20 = arith.constant 6 : i32
    %91 = arith.addi %0, %c6_i32_20 : i32
    %92 = arith.index_cast %91 : i32 to index
    %93 = memref.load %arg2[%92] : memref<16xi32, #tpu.memory_space<smem>>
    %94 = vector.broadcast %93 : i32 to vector<8x16xi32>
    %95 = arith.select %90, %94, %81 : vector<8x16xi1>, vector<8x16xi32>
    %c6_i32_21 = arith.constant 6 : i32
    %96 = vector.broadcast %c6_i32_21 : i32 to vector<8x16xi32>
    %97 = arith.cmpi eq, %2, %96 : vector<8x16xi32>
    %c6_i32_22 = arith.constant 6 : i32
    %98 = arith.addi %0, %c6_i32_22 : i32
    %99 = arith.index_cast %98 : i32 to index
    %100 = memref.load %arg3[%99] : memref<16xi32, #tpu.memory_space<smem>>
    %101 = vector.broadcast %100 : i32 to vector<8x16xi32>
    %102 = arith.select %97, %101, %88 : vector<8x16xi1>, vector<8x16xi32>
    %c7_i32 = arith.constant 7 : i32
    %103 = vector.broadcast %c7_i32 : i32 to vector<8x16xi32>
    %104 = arith.cmpi eq, %2, %103 : vector<8x16xi32>
    %c7_i32_23 = arith.constant 7 : i32
    %105 = arith.addi %0, %c7_i32_23 : i32
    %106 = arith.index_cast %105 : i32 to index
    %107 = memref.load %arg2[%106] : memref<16xi32, #tpu.memory_space<smem>>
    %108 = vector.broadcast %107 : i32 to vector<8x16xi32>
    %109 = arith.select %104, %108, %95 : vector<8x16xi1>, vector<8x16xi32>
    %c7_i32_24 = arith.constant 7 : i32
    %110 = vector.broadcast %c7_i32_24 : i32 to vector<8x16xi32>
    %111 = arith.cmpi eq, %2, %110 : vector<8x16xi32>
    %c7_i32_25 = arith.constant 7 : i32
    %112 = arith.addi %0, %c7_i32_25 : i32
    %113 = arith.index_cast %112 : i32 to index
    %114 = memref.load %arg3[%113] : memref<16xi32, #tpu.memory_space<smem>>
    %115 = vector.broadcast %114 : i32 to vector<8x16xi32>
    %116 = arith.select %111, %115, %102 : vector<8x16xi1>, vector<8x16xi32>
    %117 = arith.cmpi sge, %1, %109 : vector<8x16xi32>
    %118 = arith.cmpi slt, %1, %116 : vector<8x16xi32>
    %119 = arith.andi %117, %118 : vector<8x16xi1>
    %120 = arith.extui %119 : vector<8x16xi1> to vector<8x16xi32>
    %121 = arith.sitofp %120 : vector<8x16xi32> to vector<8x16xf32>
    %c0 = arith.constant 0 : index
    %c0_26 = arith.constant 0 : index
    %c0_27 = arith.constant 0 : index
    %122 = vector.load %arg4[%c0, %c0_26, %c0_27] : memref<1x16x128xf32, #tpu.memory_space<vmem>>, vector<1x16x128xf32>
    %123 = vector.shape_cast %122 : vector<1x16x128xf32> to vector<16x128xf32>
    %cst = arith.constant dense<0.000000e+00> : vector<8x128xf32>
    %124 = tpu.matmul %121, %123, %cst {dimension_numbers = #tpu.dot_dimension_numbers<[1], [0], [0], [1], [0, 0, 1, 1], [], []>} : vector<8x16xf32>, vector<16x128xf32>, vector<8x128xf32> -> vector<8x128xf32>
    %c0_28 = arith.constant 0 : index
    %c0_29 = arith.constant 0 : index
    %125 = vector.load %arg5[%c0_28, %c0_29] : memref<8x128xf32, #tpu.memory_space<vmem>>, vector<8x128xf32>
    tpu.vector_store %arg5[%c0_28, %c0_29], %124 {strides = array<i32>} : memref<8x128xf32, #tpu.memory_space<vmem>>, vector<8x128xf32>,
    return
  }
  func.func @transform_0(%arg0: i32, %arg1: memref<2xi32, #tpu.memory_space<smem>>, %arg2: memref<16xi32, #tpu.memory_space<smem>>, %arg3: memref<16xi32, #tpu.memory_space<smem>>) -> (i32, i32, i32) {
    %0 = arith.index_cast %arg0 : i32 to index
    %1 = memref.load %arg1[%0] : memref<2xi32, #tpu.memory_space<smem>>
    %c0_i32 = arith.constant 0 : i32
    %c0_i32_0 = arith.constant 0 : i32
    %c0_i32_1 = arith.constant 0 : i32
    return %1, %c0_i32, %c0_i32_0 : i32, i32, i32
  }
  func.func @transform_1(%arg0: i32, %arg1: memref<2xi32, #tpu.memory_space<smem>>, %arg2: memref<16xi32, #tpu.memory_space<smem>>, %arg3: memref<16xi32, #tpu.memory_space<smem>>) -> (i32, i32) {
    %c0_i32 = arith.constant 0 : i32
    %c0_i32_0 = arith.constant 0 : i32
    return %arg0, %c0_i32 : i32, i32
  }
}

</mosaic_0001>

<bundles_post_ra>
// kernel: _device_forward.1
= control target key start
LH: loop header
LB: loop body
LE: loop exit
PB: predicated region body
PF: predicated region fallthrough
CT: control target
= control target key end

     0   :  { %s368_s21 = smov [#allocation3]   ;;  %s369_s22 = smov [#allocation4]   ;;  %s464_s0 = inlined_call_operand.vmem [shape: s32[2], index: 0, kind: input, shape index: {}]   ;;  %s465_s3 = inlined_call_operand.vmem [shape: f32[2,16,128], index: 3, kind: input, shape index: {}]   ;;  %s466_s4 = inlined_call_operand.vmem [shape: f32[16,128], index: 4, kind: output, shape index: {}]   ;;  %s467_s1 = inlined_call_operand.vmem [shape: s32[16], index: 1, kind: input, shape index: {}]   ;;  %s468_s2 = inlined_call_operand.vmem [shape: s32[16], index: 2, kind: input, shape index: {}]  }
   0x1   :  { %s10_s17 = sshll.u32 %s464_s0, 4  ;;  %s15_s20 = sshll.u32 %s467_s1, 4  ;;  %s11_s17 = int_to_ptr.vmem [resolvable:$true] %s10_s17  ;;  %s16_s20 = int_to_ptr.vmem [resolvable:$true] %s15_s20 }
   0x2   :  { %13 = dma.vmem_to_smem %s11_s17, 16, %s368_s21, [#allocation2] }
   0x3   :  { %18 = dma.vmem_to_smem %s16_s20, 16, %s369_s22, [#allocation2] }
   0x4   :  { %s20_s25 = sshll.u32 %s468_s2, 4  ;;  %s370_s26 = smov [#allocation5]   ;;  %s21_s25 = int_to_ptr.vmem [resolvable:$true] %s20_s25 }
   0x5   :  { %23 = dma.vmem_to_smem %s21_s25, 16, %s370_s26, [#allocation2] }
   0x6   :  { %362 = dma.done.wait [#allocation2], 48 }
   0x7   :  { %363 = vsyncadd [#allocation2], 4294967248 }
   0x8   :  { %26 = sfence }
   0x9   :  { %s406_s0 = smov 0  }
   0xa LB: > { %s412_s1 = sadd.s32 4294967295, %s366_s0   ;;  %p300_p0 = scmp.ge.s32.totalorder %s366_s0, 1  ;;  %s366_s0 = sphi %s406_s0, %s32_s0  }
   0xb   : > { %p112_p1 = scmp.lt.s32.totalorder %s366_s0, 3 }
   0xd   : > { %p113_p2 = pnand %p300_p0, %p112_p1 }
   0xe   : > { %s132_s2 = sld [smem:[#allocation3 + %s412_s1]] (!%p113_p2)  ;;  %s418_s27 = sshll.u32 (!%p113_p2), %s412_s1, 3 }
   0xf   : > { %116 = sbr.rel (%p113_p2) target bundleno = 169 (0xa9), region = 24  ;;  %s149_s28 = sld [smem:[#allocation4 + %s418_s27]] (!%p113_p2) }
  0x10   : > { %s156_s29 = sadd.s32 (!%p113_p2), 1, %s418_s27  ;;  %s152_s30 = sld [smem:[#allocation5 + %s418_s27]] (!%p113_p2) }
  0x11   : > { %s164_s5 = sadd.s32 (!%p113_p2), 2, %s418_s27  ;;  %s157_s6 = sld [smem:[#allocation4 + %s156_s29]] (!%p113_p2) }
  0x12   : > { %s160_s7 = sld [smem:[#allocation5 + %s156_s29]] (!%p113_p2)  ;;  %s172_s8 = sadd.s32 (!%p113_p2), 3, %s418_s27 }
  0x13   : > { %s165_s9 = sld [smem:[#allocation4 + %s164_s5]] (!%p113_p2)  ;;  %s180_s10 = sadd.s32 (!%p113_p2), 4, %s418_s27 }
  0x14   : > { %v144_v0 = vlaneseq  ;;  %p133_p3 = scmp.lt.s32.totalorder %s132_s2, 1  ;;  %s168_s11 = sld [smem:[#allocation5 + %s164_s5]]  ;;  %vm218_vm10 = vcmask 130048   ;;  %v371_v37 = vmov 0.0  }
  0x15   : > { %v150_v2 = vstv %s149_s28  ;;  %s173_s12 = sld [smem:[#allocation4 + %s172_s8]]  ;;  %s188_s13 = sadd.s32 5, %s418_s27 }
  0x16   : > { %v423_v1 = vshrl.u32 %v144_v0, 7  ;;  %s470_s2 = smov (!%p133_p3, %s132_s2), 1  ;;  %v153_v4 = vstv %s152_s30  ;;  %s176_s14 = sld [smem:[#allocation5 + %s172_s8]]  ;;  %v145_v27 = vand.u32 127, %v144_v0 }
  0x17   : > { %v158_v6 = vstv %s157_s6  ;;  %s196_s15 = sadd.s32 6, %s418_s27  ;;  %s309_s16 = sshll.u32 %s470_s2, 4 }
  0x18   : > { %vm148_vm0 = vcmp.eq.s32.totalorder %v423_v1, 0  ;;  %vm155_vm1 = vcmp.eq.s32.totalorder %v423_v1, 1  ;;  %vm163_vm2 = vcmp.eq.s32.totalorder %v423_v1, 2  ;;  %v161_v8 = vstv %s160_s7  ;;  %s181_s17 = sld [smem:[#allocation4 + %s180_s10]]  ;;  %s137_s20 = scalar_lea.vmem %s465_s3, %s309_s16 }
  0x19   : > { %v151_v3 = vsel %vm148_vm0, %v150_v2, 0  ;;  %v154_v5 = vsel %vm148_vm0, %v153_v4, 0  ;;  %v166_v10 = vstv %s165_s9  ;;  %vm171_vm3 = vcmp.eq.s32.totalorder %v423_v1, 3  ;;  %s184_s21 = sld [smem:[#allocation5 + %s180_s10]]  ;;  %v217_v11 = vld [vmem:[%s137_s20 + $0x8] sm:$0xff]  ;;  %v216_v12 = vld [vmem:[%s137_s20] sm:$0xff] }
  0x1a   : > { %v159_v7 = vsel %vm155_vm1, %v158_v6, %v151_v3  ;;  %v162_v9 = vsel %vm155_vm1, %v161_v8, %v154_v5  ;;  %v169_v14 = vstv %s168_s11  ;;  %s189_s22 = sld [smem:[#allocation4 + %s188_s13]]  ;;  %236 = vmatpush.msra.mxu0 %v217_v11  ;;  %s204_s24 = sadd.s32 7, %s418_s27  ;;  %vm179_vm4 = vcmp.eq.s32.totalorder %v423_v1, 4 }
  0x1b   : > { %v167_v13 = vsel %vm163_vm2, %v166_v10, %v159_v7  ;;  %v170_v15 = vsel %vm163_vm2, %v169_v14, %v162_v9  ;;  %v174_v16 = vstv %s173_s12  ;;  %s192_s23 = sld [smem:[#allocation5 + %s188_s13]]  ;;  %vm187_vm5 = vcmp.eq.s32.totalorder %v423_v1, 5  ;;  %p139_p4 = scmp.lt.s32.totalorder %s412_s1, 1 }
  0x1c   : > { %v175_v17 = vsel %vm171_vm3, %v174_v16, %v167_v13  ;;  %s197_s25 = sld [smem:[#allocation4 + %s196_s15]]  ;;  %237 = vmatpush.msra.mxu0 %v216_v12  ;;  %v177_v18 = vstv %s176_s14  ;;  %vm195_vm6 = vcmp.eq.s32.totalorder %v423_v1, 6  ;;  %vm203_vm7 = vcmp.eq.s32.totalorder %v423_v1, 7 }
  0x1d   : > { %s200_s26 = sld [smem:[#allocation5 + %s196_s15]]  ;;  %v178_v19 = vsel %vm171_vm3, %v177_v18, %v170_v15  ;;  %s472_s1 = smov (!%p139_p4, %s412_s1), 1 }
  0x1e   : > { %v182_v20 = vstv %s181_s17  ;;  %s205_s2 = sld [smem:[#allocation4 + %s204_s24]]  ;;  %s303_s27 = sshll.u32 %s472_s1, 3 }
  0x1f   : > { %v183_v21 = vsel %vm179_vm4, %v182_v20, %v175_v17  ;;  %v185_v22 = vstv %s184_s21  ;;  %s208_s28 = sld [smem:[#allocation5 + %s204_s24]]  ;;  %s142_s5 = scalar_lea.vmem %s466_s4, %s303_s27 }
  0x20   : > { %v186_v23 = vsel %vm179_vm4, %v185_v22, %v178_v19  ;;  %v190_v24 = vstv %s189_s22 }
  0x21   : > { %v191_v25 = vsel %vm187_vm5, %v190_v24, %v183_v21  ;;  %v193_v26 = vstv %s192_s23 }
  0x22   : > { %v194_v28 = vsel %vm187_vm5, %v193_v26, %v186_v23  ;;  %v198_v29 = vstv %s197_s25 }
  0x23   : > { %v199_v30 = vsel %vm195_vm6, %v198_v29, %v191_v25  ;;  %v201_v31 = vstv %s200_s26 }
  0x24   : > { %v202_v32 = vsel %vm195_vm6, %v201_v31, %v194_v28  ;;  %v206_v33 = vstv %s205_s2 }
  0x25   : > { %v207_v34 = vsel %vm203_vm7, %v206_v33, %v199_v30  ;;  %v209_v35 = vstv %s208_s28 }
  0x26   : > { %v210_v36 = vsel %vm203_vm7, %v209_v35, %v202_v32  ;;  %vm211_vm8 = vcmp.ge.s32.totalorder %v145_v27, %v207_v34 }
  0x27   : > { %vm212_vm9 = vcmp.lt.s32.totalorder %v145_v27, %v210_v36 }
  0x28   : > { %vm213_vm11 = vmand %vm211_vm8, %vm212_vm9 }
  0x29   : > { %v305_v38 = vsel %vm213_vm11, 1.0, %v371_v37 }
  0x2a   : > { %306 = vmatmul.msk.f32.vlgmr.msra.gmra.mxu0 %vm218_vm10, %v305_v38 }
  0xa7   : > { %v239_v39 = vpop.f32.mrf.mxu0 }
  0xa8   : > { %242 = vst [vmem:[%s142_s5] sm:$0xff] %v239_v39 }
  0xa9 PF: > { %s32_s0 = sadd.s32 1, %s366_s0  }
  0xaa   : > { %p29_p5 = scmp.ge.s32.totalorder %s32_s0, 4  }
  0xac   :  { %31 = sbr.rel (!%p29_p5) target bundleno = 10 (0xa), region = 54 }

</bundles_post_ra>
